<compile_context>
chip_gen: v6e
topology: v6e:2x2x1
jax: 0.10.0
libtpu: 0.0.40
codegen_flags: <defaults>
</compile_context>

<pallas_src>
import functools

import jax
import jax.numpy as jnp
from jax import lax
from jax.experimental import pallas as pl
from jax.experimental.pallas import tpu as pltpu


def _round_up(x, m):
    return ((x + m - 1) // m) * m


def _cdiv(a, b):
    return -(-a // b)


def _net_kernel(x_ref, w1_ref, b1_ref, w2_ref, b2_ref, o_ref):
    x = x_ref[...]      # (TB, 5)  activations, natural (batch, feature) layout
    w1 = w1_ref[...]    # (16, 5)  torch-native (out_features, in_features)
    b1 = b1_ref[...]    # (16, 1)
    w2 = w2_ref[...]    # (10, 16)
    b2 = b2_ref[...]    # (10, 1)

    # Layer 1 + ReLU, computed batch-in-lanes: h = W1 @ x^T -> (16, TB).
    # Contract the shared feature axis (last dim of both operands) directly —
    # same dimension numbers as q @ k^T in flash attention — so no host-side
    # or in-kernel transpose of the activations is needed.
    h = lax.dot_general(w1, x, (((1,), (1,)), ((), ())),
                        preferred_element_type=jnp.float32) + b1
    h = jnp.maximum(h, 0.0)

    # Layer 2: (10, 16) @ (16, TB) -> (10, TB), still batch-in-lanes.
    logits = jnp.dot(w2, h, preferred_element_type=jnp.float32) + b2

    # Softmax over the class axis (axis 0 in this layout).  Exact division so
    # every column sums to 1 to f32 accuracy.
    m = jnp.max(logits, axis=0, keepdims=True)
    e = jnp.exp(logits - m)
    denom = jnp.sum(e, axis=0, keepdims=True)
    o_ref[...] = e / denom


def _choose_tile(batch, tb):
    # Small-batch clamp: never compute more than one extra 128-lane tile.
    tb_eff = min(tb, _round_up(batch, 128))
    # For larger batches make sure there are >= 2 tiles so the "parallel"
    # grid axis can be split across v7x's two TensorCores (harmless on
    # single-TC v5e/v6e: one extra ~0.35 us grid step).
    if batch > 128 and _cdiv(batch, tb_eff) < 2:
        tb_eff = _round_up(_cdiv(batch, 2), 128)
    return tb_eff


@functools.partial(jax.jit, static_argnames=("tb",))
def net_forward_classmajor(x, w1, b1, w2, b2, *, tb=8192):
    """Class-major output: returns softmax probabilities of shape (10, B).

    x: (B, 5) f32 in its natural layout.  Weights are torch-native:
    w1 (16, 5), b1 (16, 1), w2 (10, 16), b2 (10, 1).
    """
    assert tb % 128 == 0, "batch tile must be a multiple of 128 lanes"
    B = x.shape[0]
    tb_eff = _choose_tile(B, tb)
    n_tiles = _cdiv(B, tb_eff)
    Bp = n_tiles * tb_eff
    if Bp != B:
        # Only a ragged remainder forces a pad; tile-aligned batches stream
        # straight from HBM with zero host-side relayout.
        x = jnp.pad(x, ((0, Bp - B), (0, 0)))

    out = pl.pallas_call(
        _net_kernel,
        out_shape=jax.ShapeDtypeStruct((10, Bp), jnp.float32),
        grid=(n_tiles,),
        in_specs=[
            pl.BlockSpec((tb_eff, 5), lambda i: (i, 0)),   # activations: streamed
            pl.BlockSpec((16, 5), lambda i: (0, 0)),       # weights: VMEM-resident
            pl.BlockSpec((16, 1), lambda i: (0, 0)),
            pl.BlockSpec((10, 16), lambda i: (0, 0)),
            pl.BlockSpec((10, 1), lambda i: (0, 0)),
        ],
        out_specs=pl.BlockSpec((10, tb_eff), lambda i: (0, i)),  # lane-dense stores
        compiler_params=pltpu.CompilerParams(
            dimension_semantics=("parallel",),
            # Double-buffered footprint at tb=8192 (f32, VMEM lane/sublane pad):
            #   x    : 2 * 8192 * 128 * 4  = 8 MiB   (5 lanes pad to 128)
            #   out  : 2 * 16 * 8192 * 4   = 1 MiB   (10 classes pad to 16 rows)
            #   w/b  : < 0.1 MiB
            # => ~9 MiB total; 32 MiB cap leaves headroom on all generations
            # (v5e/v6e 128 MiB, v7x 64 MiB physical VMEM).
            vmem_limit_bytes=32 << 20,
        ),
    )(x, w1, b1, w2, b2)

    return out[:, :B] if Bp != B else out


@functools.partial(jax.jit, static_argnames=("tb",))
def net_forward(x, w1, b1, w2, b2, *, tb=8192):
    """Drop-in equivalent of the torch module: returns (B, 10) probabilities.

    The final transpose is the only host-side relayout left; consumers that can
    take class-major (10, B) output should call `net_forward_classmajor`.
    """
    return net_forward_classmajor(x, w1, b1, w2, b2, tb=tb).T


def init_params(key):
    """Deterministic init mirroring torch.nn.Linear's uniform(-1/sqrt(in), +)."""
    k1, k2, k3, k4 = jax.random.split(key, 4)
    bound1 = 1.0 / jnp.sqrt(5.0)     # Linear(5, 16)
    w1 = jax.random.uniform(k1, (16, 5), jnp.float32, -bound1, bound1)
    b1 = jax.random.uniform(k2, (16, 1), jnp.float32, -bound1, bound1)
    bound2 = 1.0 / jnp.sqrt(16.0)    # Linear(16, 10)
    w2 = jax.random.uniform(k3, (10, 16), jnp.float32, -bound2, bound2)
    b2 = jax.random.uniform(k4, (10, 1), jnp.float32, -bound2, bound2)
    return w1, b1, w2, b2


def reference_forward(x, w1, b1, w2, b2):
    h = jnp.maximum(x @ w1.T + b1.T, 0.0)
    return jax.nn.softmax(h @ w2.T + b2.T, axis=-1)


if __name__ == "__main__":
    key = jax.random.PRNGKey(0)
    kx, kp = jax.random.split(key)
    w1, b1, w2, b2 = init_params(kp)

    # Two small cases: single-tile tiny batch and a multi-tile ragged batch.
    for B in (8, 300):
        x = jax.random.normal(jax.random.fold_in(kx, B), (B, 5), jnp.float32)

        out = jax.block_until_ready(net_forward(x, w1, b1, w2, b2))
        ref = reference_forward(x, w1, b1, w2, b2)

        assert out.shape == (B, 10)
        assert jnp.allclose(out, ref, atol=2e-3, rtol=2e-3)
        # Exact softmax normalization (this is what the approx reciprocal broke).
        assert jnp.allclose(jnp.sum(out, axis=-1), jnp.ones((B,)), atol=1e-5)

    print("KERNEL_OK")
</pallas_src>

<mosaic_0001>
module attributes {stable_mosaic.version = 11 : i64} {
  func.func @_net_kernel(%arg0: i32, %arg1: memref<128x5xf32, #tpu.memory_space<vmem>>, %arg2: memref<16x5xf32, #tpu.memory_space<vmem>>, %arg3: memref<16x1xf32, #tpu.memory_space<vmem>>, %arg4: memref<10x16xf32, #tpu.memory_space<vmem>>, %arg5: memref<10x1xf32, #tpu.memory_space<vmem>>, %arg6: memref<10x128xf32, #tpu.memory_space<vmem>>) attributes {dimension_semantics = [#tpu.dimension_semantics<parallel>], iteration_bounds = array<i64: 1>, scalar_prefetch = 0 : i64, scratch_operands = 0 : i64, tpu.core_type = #tpu.core_type<tc>, window_params = [{transform_indices = @transform_0, window_bounds = array<i64: 128, 5>}, {pipeline_mode = #tpu.pipeline_mode<synchronous>, transform_indices = @transform_1, window_bounds = array<i64: 16, 5>}, {pipeline_mode = #tpu.pipeline_mode<synchronous>, transform_indices = @transform_2, window_bounds = array<i64: 16, 1>}, {pipeline_mode = #tpu.pipeline_mode<synchronous>, transform_indices = @transform_3, window_bounds = array<i64: 10, 16>}, {pipeline_mode = #tpu.pipeline_mode<synchronous>, transform_indices = @transform_4, window_bounds = array<i64: 10, 1>}, {transform_indices = @transform_5, window_bounds = array<i64: 10, 128>}]} {
    %c0 = arith.constant 0 : index
    %c0_0 = arith.constant 0 : index
    %0 = vector.load %arg1[%c0, %c0_0] : memref<128x5xf32, #tpu.memory_space<vmem>>, vector<128x5xf32>
    %c0_1 = arith.constant 0 : index
    %c0_2 = arith.constant 0 : index
    %1 = vector.load %arg2[%c0_1, %c0_2] : memref<16x5xf32, #tpu.memory_space<vmem>>, vector<16x5xf32>
    %c0_3 = arith.constant 0 : index
    %c0_4 = arith.constant 0 : index
    %2 = vector.load %arg3[%c0_3, %c0_4] : memref<16x1xf32, #tpu.memory_space<vmem>>, vector<16x1xf32>
    %c0_5 = arith.constant 0 : index
    %c0_6 = arith.constant 0 : index
    %3 = vector.load %arg4[%c0_5, %c0_6] : memref<10x16xf32, #tpu.memory_space<vmem>>, vector<10x16xf32>
    %c0_7 = arith.constant 0 : index
    %c0_8 = arith.constant 0 : index
    %4 = vector.load %arg5[%c0_7, %c0_8] : memref<10x1xf32, #tpu.memory_space<vmem>>, vector<10x1xf32>
    %cst = arith.constant dense<0.000000e+00> : vector<16x128xf32>
    %5 = tpu.matmul %1, %0, %cst {dimension_numbers = #tpu.dot_dimension_numbers<[1], [1], [0], [0], [0, 0, 1, 0], [], []>} : vector<16x5xf32>, vector<128x5xf32>, vector<16x128xf32> -> vector<16x128xf32>
    %6 = vector.broadcast %2 : vector<16x1xf32> to vector<16x128xf32>
    %7 = arith.addf %5, %6 : vector<16x128xf32>
    %cst_9 = arith.constant 0.000000e+00 : f32
    %8 = vector.broadcast %cst_9 : f32 to vector<16x128xf32>
    %9 = arith.maximumf %7, %8 : vector<16x128xf32>
    %cst_10 = arith.constant dense<0.000000e+00> : vector<10x128xf32>
    %10 = tpu.matmul %3, %9, %cst_10 {dimension_numbers = #tpu.dot_dimension_numbers<[1], [0], [0], [1], [0, 0, 1, 1], [], []>} : vector<10x16xf32>, vector<16x128xf32>, vector<10x128xf32> -> vector<10x128xf32>
    %11 = vector.broadcast %4 : vector<10x1xf32> to vector<10x128xf32>
    %12 = arith.addf %10, %11 : vector<10x128xf32>
    %cst_11 = arith.constant dense<0xFF800000> : vector<128xf32>
    %13 = vector.multi_reduction <maximumf>, %12, %cst_11 [0] : vector<10x128xf32> to vector<128xf32>
    %14 = vector.shape_cast %13 : vector<128xf32> to vector<1x128xf32>
    %15 = vector.broadcast %14 : vector<1x128xf32> to vector<10x128xf32>
    %16 = arith.subf %12, %15 : vector<10x128xf32>
    %17 = math.exp %16 : vector<10x128xf32>
    %cst_12 = arith.constant dense<0.000000e+00> : vector<128xf32>
    %18 = vector.multi_reduction <add>, %17, %cst_12 [0] : vector<10x128xf32> to vector<128xf32>
    %19 = vector.shape_cast %18 : vector<128xf32> to vector<1x128xf32>
    %20 = vector.broadcast %19 : vector<1x128xf32> to vector<10x128xf32>
    %21 = arith.divf %17, %20 : vector<10x128xf32>
    %c0_13 = arith.constant 0 : index
    %c0_14 = arith.constant 0 : index
    %22 = vector.load %arg6[%c0_13, %c0_14] : memref<10x128xf32, #tpu.memory_space<vmem>>, vector<10x128xf32>
    tpu.vector_store %arg6[%c0_13, %c0_14], %21 {strides = array<i32>} : memref<10x128xf32, #tpu.memory_space<vmem>>, vector<10x128xf32>,
    return
  }
  func.func @transform_0(%arg0: i32) -> (i32, i32) {
    %c0_i32 = arith.constant 0 : i32
    %c0_i32_0 = arith.constant 0 : i32
    return %arg0, %c0_i32 : i32, i32
  }
  func.func @transform_1(%arg0: i32) -> (i32, i32) {
    %c0_i32 = arith.constant 0 : i32
    %c0_i32_0 = arith.constant 0 : i32
    %c0_i32_1 = arith.constant 0 : i32
    return %c0_i32, %c0_i32_0 : i32, i32
  }
  func.func @transform_2(%arg0: i32) -> (i32, i32) {
    %c0_i32 = arith.constant 0 : i32
    %c0_i32_0 = arith.constant 0 : i32
    %c0_i32_1 = arith.constant 0 : i32
    return %c0_i32, %c0_i32_0 : i32, i32
  }
  func.func @transform_3(%arg0: i32) -> (i32, i32) {
    %c0_i32 = arith.constant 0 : i32
    %c0_i32_0 = arith.constant 0 : i32
    %c0_i32_1 = arith.constant 0 : i32
    return %c0_i32, %c0_i32_0 : i32, i32
  }
  func.func @transform_4(%arg0: i32) -> (i32, i32) {
    %c0_i32 = arith.constant 0 : i32
    %c0_i32_0 = arith.constant 0 : i32
    %c0_i32_1 = arith.constant 0 : i32
    return %c0_i32, %c0_i32_0 : i32, i32
  }
  func.func @transform_5(%arg0: i32) -> (i32, i32) {
    %c0_i32 = arith.constant 0 : i32
    %c0_i32_0 = arith.constant 0 : i32
    return %c0_i32, %arg0 : i32, i32
  }
}

</mosaic_0001>

<bundles_post_ra>
// kernel: net_forward_classmajor.1
= control target key start
LH: loop header
LB: loop body
LE: loop exit
PB: predicated region body
PF: predicated region fallthrough
CT: control target
= control target key end

     0   :  { %vm54_vm0 = vcmask 39936   ;;  %v403_v2 = vmov 0   ;;  %vm196_vm1 = vcmask 130048   ;;  %vm278_vm2 = vcmask 1041408   ;;  %s550_s0 = inlined_call_operand.vmem [shape: f32[128,5], index: 0, kind: input, shape index: {}]   ;;  %s551_s1 = inlined_call_operand.vmem [shape: f32[16,5], index: 1, kind: input, shape index: {}]   ;;  %s552_s2 = inlined_call_operand.vmem [shape: f32[16,1], index: 2, kind: input, shape index: {}]   ;;  %s553_s3 = inlined_call_operand.vmem [shape: f32[10,16], index: 3, kind: input, shape index: {}]   ;;  %s554_s4 = inlined_call_operand.vmem [shape: f32[10,1], index: 4, kind: input, shape index: {}]   ;;  %s555_s5 = inlined_call_operand.vmem [shape: f32[10,128], index: 5, kind: output, shape index: {}]  }
   0x1   :  { %v35_v0 = vld [vmem:[%s550_s0 + $0x78] sm:$0xff]  ;;  %v34_v1 = vld [vmem:[%s550_s0 + $0x70] sm:$0xff]  ;;  %395 = vset.pattern.permute.xlu0 %v403_v2  ;;  %396 = vset.pattern.permute.xlu1 %v403_v2  ;;  %v33_v3 = vld [vmem:[%s550_s0 + $0x68] sm:$0xff] }
   0x2   :  { %352 = vmatprep.subr.msk.mxu0 %vm54_vm0, %v35_v0  ;;  %v36_v4 = vld [vmem:[%s551_s1] sm:$0xff]  ;;  %v39_v5 = vld [vmem:[%s552_s2 + $0x8] sm:$0xff]  ;;  %v31_v8 = vld [vmem:[%s550_s0 + $0x58] sm:$0xff] }
   0x3   :  { %353 = vmatpush3.xpose.msk.msra.mxu0 %vm54_vm0, %v35_v0  ;;  %384 = vmatprep.mubr.msk.f32.mxu0 %vm54_vm0, %v36_v4  ;;  %v32_v6 = vld [vmem:[%s550_s0 + $0x60] sm:$0xff]  ;;  %v30_v9 = vld [vmem:[%s550_s0 + $0x50] sm:$0xff]  ;;  %v29_v10 = vld [vmem:[%s550_s0 + $0x48] sm:$0xff] }
   0x4   :  { %354 = vmatprep.subr.msk.mxu0 %vm54_vm0, %v34_v1  ;;  %51 = vperm.xlu0 %395, %v39_v5   ;;  %v38_v7 = vld [vmem:[%s552_s2] sm:$0xff]  ;;  %v27_v12 = vld [vmem:[%s550_s0 + $0x38] sm:$0xff]  ;;  %v26_v13 = vld [vmem:[%s550_s0 + $0x30] sm:$0xff] }
   0x5   :  { %v28_v11 = vld [vmem:[%s550_s0 + $0x40] sm:$0xff]  ;;  %v25_v14 = vld [vmem:[%s550_s0 + $0x28] sm:$0xff]  ;;  %v23_v16 = vld [vmem:[%s550_s0 + $0x18] sm:$0xff] }
   0x6   :  { %v24_v15 = vld [vmem:[%s550_s0 + $0x20] sm:$0xff]  ;;  %v22_v17 = vld [vmem:[%s550_s0 + $0x10] sm:$0xff]  ;;  %v21_v18 = vld [vmem:[%s550_s0 + $0x8] sm:$0xff] }
   0x7   :  { %355 = vmatpush3.xpose.msk.msra.mxu0 %vm54_vm0, %v34_v1  ;;  %v20_v19 = vld [vmem:[%s550_s0] sm:$0xff]  ;;  %v37_v20 = vld [vmem:[%s551_s1 + $0x8] sm:$0xff] }
   0x8   :  { %356 = vmatprep.subr.msk.mxu0 %vm54_vm0, %v33_v3  ;;  %46 = vperm.xlu0 %395, %v38_v7   ;;  %v40_v21 = vld [vmem:[%s553_s3] sm:$0xff]  ;;  %v43_v22 = vld [vmem:[%s554_s4 + $0x8] sm:$0x3] }
   0x9   :  { %391 = vmatprep.mubr.msk.f32.mxu1 %vm196_vm1, %v40_v21  ;;  %193 = vperm.xlu1 %396, %v43_v22   ;;  %v42_v23 = vld [vmem:[%s554_s4] sm:$0xff]  ;;  %v41_v32 = vld [vmem:[%s553_s3 + $0x8] sm:$0x3] }
   0xb   :  { %357 = vmatpush3.xpose.msk.msra.mxu0 %vm54_vm0, %v33_v3 }
   0xc   :  { %358 = vmatprep.subr.msk.mxu0 %vm54_vm0, %v32_v6 }
   0xd   :  { %188 = vperm.xlu1 %396, %v42_v23  }
   0xf   :  { %359 = vmatpush3.xpose.msk.msra.mxu0 %vm54_vm0, %v32_v6 }
  0x10   :  { %360 = vmatprep.subr.msk.mxu0 %vm54_vm0, %v31_v8 }
  0x13   :  { %361 = vmatpush3.xpose.msk.msra.mxu0 %vm54_vm0, %v31_v8 }
  0x14   :  { %362 = vmatprep.subr.msk.mxu0 %vm54_vm0, %v30_v9 }
  0x17   :  { %363 = vmatpush3.xpose.msk.msra.mxu0 %vm54_vm0, %v30_v9 }
  0x18   :  { %364 = vmatprep.subr.msk.mxu0 %vm54_vm0, %v29_v10 }
  0x1b   :  { %365 = vmatpush3.xpose.msk.msra.mxu0 %vm54_vm0, %v29_v10 }
  0x1c   :  { %366 = vmatprep.subr.msk.mxu0 %vm54_vm0, %v28_v11 }
  0x1f   :  { %367 = vmatpush3.xpose.msk.msra.mxu0 %vm54_vm0, %v28_v11 }
  0x20   :  { %368 = vmatprep.subr.msk.mxu0 %vm54_vm0, %v27_v12 }
  0x23   :  { %369 = vmatpush3.xpose.msk.msra.mxu0 %vm54_vm0, %v27_v12 }
  0x24   :  { %370 = vmatprep.subr.msk.mxu0 %vm54_vm0, %v26_v13 }
  0x27   :  { %371 = vmatpush3.xpose.msk.msra.mxu0 %vm54_vm0, %v26_v13 }
  0x28   :  { %372 = vmatprep.subr.msk.mxu0 %vm54_vm0, %v25_v14 }
  0x2b   :  { %373 = vmatpush3.xpose.msk.msra.mxu0 %vm54_vm0, %v25_v14 }
  0x2c   :  { %374 = vmatprep.subr.msk.mxu0 %vm54_vm0, %v24_v15 }
  0x2f   :  { %375 = vmatpush3.xpose.msk.msra.mxu0 %vm54_vm0, %v24_v15 }
  0x30   :  { %376 = vmatprep.subr.msk.mxu0 %vm54_vm0, %v23_v16 }
  0x33   :  { %377 = vmatpush3.xpose.msk.msra.mxu0 %vm54_vm0, %v23_v16 }
  0x34   :  { %378 = vmatprep.subr.msk.mxu0 %vm54_vm0, %v22_v17 }
  0x37   :  { %379 = vmatpush3.xpose.msk.msra.mxu0 %vm54_vm0, %v22_v17 }
  0x38   :  { %380 = vmatprep.subr.msk.mxu0 %vm54_vm0, %v21_v18 }
  0x3b   :  { %381 = vmatpush3.xpose.msk.msra.mxu0 %vm54_vm0, %v21_v18 }
  0x3c   :  { %382 = vmatprep.subr.msk.mxu0 %vm54_vm0, %v20_v19 }
  0x3f   :  { %383 = vmatpush3.xpose.msk.msra.mxu0 %vm54_vm0, %v20_v19 }
  0x42   :  { %385 = vmatmul.mubr.msk.f32.vlgmr.msra.gmra.mxu0 %vm54_vm0, %v37_v20 }
  0x7f   :  { %v52_v24 = vpop.permute.xlu0 %51 }
  0x83   :  { %v47_v27 = vpop.permute.xlu0 %46 }
  0x84   :  { %v194_v33 = vpop.permute.xlu1 %193 }
  0x88   :  { %v189_v36 = vpop.permute.xlu1 %188 }
 0x102   :  { %v386_v25 = vpop.f32.mrf.mxu0 }
 0x103   :  { %v181_v26 = vadd.f32 %v386_v25, %v52_v24 }
 0x104   :  { %v175_v28 = vpop.f32.mrf.mxu0 }
 0x105   :  { %v185_v29 = vmax.f32 %v181_v26, 0.0  ;;  %v176_v30 = vadd.f32 %v175_v28, %v47_v27 }
 0x107   :  { %v184_v31 = vmax.f32 %v176_v30, 0.0  ;;  %387 = vmatprep.subr.mxu1 %v185_v29 }
 0x108   :  { %388 = vmatpush3.msra.mxu1 %v185_v29 }
 0x109   :  { %389 = vmatprep.subr.mxu1 %v184_v31 }
 0x10a   :  { %390 = vmatpush3.msra.mxu1 %v184_v31 }
 0x10b   :  { %392 = vmatmul.mubr.msk.f32.vlgmr.msra.gmra.mxu1 %vm196_vm1, %v41_v32 }
 0x1cb   :  { %v393_v34 = vpop.f32.mrf.mxu1 }
 0x1cc   :  { %v275_v35 = vadd.f32 %v393_v34, %v194_v33 }
 0x1cd   :  { %v269_v37 = vpop.f32.mrf.mxu1 }
 0x1ce   :  { %v279_v38 = vsel %vm278_vm2, %v275_v35, -inf  ;;  %v270_v39 = vadd.f32 %v269_v37, %v189_v36 }
 0x1d0   :  { %v280_v40 = vmax.f32 %v270_v39, %v279_v38 }
 0x1d2   :  { %v281_v41 = vrot.slane %v280_v40, 4 }
 0x1d4   :  { %v282_v42 = vmax.f32 %v280_v40, %v281_v41 }
 0x1d6   :  { %v283_v43 = vrot.slane %v282_v42, 2 }
 0x1d8   :  { %v284_v44 = vmax.f32 %v282_v42, %v283_v43 }
 0x1da   :  { %v285_v45 = vrot.slane %v284_v44, 1 }
 0x1dc   :  { %v286_v46 = vmax.f32 %v284_v44, %v285_v45 }
 0x1de   :  { %v287_v47 = vsub.f32 %v270_v39, %v286_v46  ;;  %v288_v48 = vsub.f32 %v275_v35, %v286_v46 }
 0x1e0   :  { %v289_v49 = vmul.f32 1.442695, %v287_v47  ;;  %v291_v50 = vmul.f32 1.442695, %v288_v48 }
 0x1e2   :  { %397 = vpow2.f32 %v289_v49 }
 0x1e3   :  { %399 = vpow2.f32 %v291_v50 }
 0x1ef   :  { %v398_v51 = vpop.eup %397 }
 0x1f0   :  { %v400_v52 = vpop.eup %399 }
 0x1f1   :  { %v293_v53 = vsel %vm278_vm2, %v400_v52, 0.0 }
 0x1f2   :  { %v294_v54 = vadd.f32 %v398_v51, %v293_v53 }
 0x1f4   :  { %v295_v55 = vrot.slane %v294_v54, 4 }
 0x1f6   :  { %v296_v56 = vadd.f32 %v295_v55, %v294_v54 }
 0x1f8   :  { %v297_v57 = vrot.slane %v296_v56, 2 }
 0x1fa   :  { %v298_v58 = vadd.f32 %v297_v57, %v296_v56 }
 0x1fc   :  { %v299_v59 = vrot.slane %v298_v58, 1 }
 0x1fe   :  { %v300_v60 = vadd.f32 %v299_v59, %v298_v58 }
 0x200   :  { %401 = vrcp.f32 %v300_v60 }
 0x20d   :  { %v402_v61 = vpop.eup %401 }
 0x20e   :  { %v302_v62 = vmul.f32 %v402_v61, %v398_v51  ;;  %v303_v63 = vmul.f32 %v402_v61, %v400_v52 }
 0x210   :  { %304 = vst [vmem:[%s555_s5] sm:$0xff] %v302_v62  ;;  %305 = vst [vmem:[%s555_s5 + $0x8] sm:$0x3] %v303_v63 }

</bundles_post_ra>
